<compile_context>
chip_gen: v7x
topology: tpu7x:2x2x1
jax: 0.10.0
libtpu: 0.0.40
codegen_flags: <defaults>
</compile_context>

<pallas_src>
import jax
import jax.numpy as jnp
from jax.experimental import pallas as pl
from jax.experimental.pallas import tpu as pltpu

_LANE = 128


def _round_up(v, m):
    return ((v + m - 1) // m) * m


def _pick_tile(n, target_lanes):
    """Pick a lane tile (multiple of 128) and the padded N it divides."""
    n_lane = _round_up(max(n, 1), _LANE)
    tn = max(_LANE, min((target_lanes // _LANE) * _LANE, n_lane))
    # v7x has two TensorCores sharing HBM: prefer >=2 grid programs when the
    # problem is large enough so the "parallel" axis can use both cores.
    if n_lane // tn < 2 and n_lane >= 2 * _LANE:
        tn = max(_LANE, ((n_lane // 2) // _LANE) * _LANE)
    n_pad = _round_up(n_lane, tn)
    return tn, n_pad


# ----------------------------------------------------------------------------
# Kernels
# ----------------------------------------------------------------------------
def _sitm_gate_kernel(xp_ref, w_ref, b_ref, delta_ref, out_ref):
    """Fused reset-gate 1x1 conv + sigmoids + gated update.

    xp_ref : [2C, TN] bf16   stacked (input || conv(pre_state)) rows, lane-dense
    w_ref  : [C, 2C]  bf16   1x1 reset-conv weight
    b_ref  : [C, 1]   f32    reset-conv bias
    delta  : [1]      f32    (SMEM scalar)
    out    : [C, TN]  f32
    """
    xp_h = xp_ref[...]                                     # [2C, TN] bf16
    # reset = sigmoid( W_reset @ cat([x, pre]) + b )  -- single fused matmul
    gate = jnp.dot(w_ref[...], xp_h,
                   preferred_element_type=jnp.float32) + b_ref[...]   # [C, TN]
    reset = jax.nn.sigmoid(gate)

    C = out_ref.shape[0]
    xp = xp_h.astype(jnp.float32)
    x, pre = xp[:C], xp[C:]                                # [C, TN] each (f32)

    # update = sigmoid(x + reset * pre);  new_state = x + delta * (update * x)
    update = jax.nn.sigmoid(x + reset * pre)
    out_ref[...] = x + delta_ref[0] * (update * x)


def _sitm_none_kernel(x_ref, delta_ref, out_ref):
    """pre_state is None -> pre == 0, reset gate has no effect."""
    x = x_ref[...].astype(jnp.float32)
    out_ref[...] = x + delta_ref[0] * (jax.nn.sigmoid(x) * x)


# ----------------------------------------------------------------------------
# Wrappers
# ----------------------------------------------------------------------------
def _sitm_none(x_nchw, delta, tile_lanes):
    B, C, H, W = x_nchw.shape
    N = B * H * W
    x_cm = jnp.transpose(x_nchw, (1, 0, 2, 3)).reshape(C, N).astype(jnp.bfloat16)

    tn, n_pad = _pick_tile(N, tile_lanes)
    if n_pad != N:
        x_cm = jnp.pad(x_cm, ((0, 0), (0, n_pad - N)))

    out = pl.pallas_call(
        _sitm_none_kernel,
        out_shape=jax.ShapeDtypeStruct((C, n_pad), jnp.float32),
        grid_spec=pltpu.PrefetchScalarGridSpec(
            num_scalar_prefetch=0,
            grid=(n_pad // tn,),
            in_specs=[
                pl.BlockSpec((C, tn), lambda i: (0, i)),            # x rows
                pl.BlockSpec(memory_space=pltpu.MemorySpace.SMEM),  # delta
            ],
            out_specs=pl.BlockSpec((C, tn), lambda i: (0, i)),
        ),
        compiler_params=pltpu.CompilerParams(dimension_semantics=("parallel",)),
    )(x_cm, delta.reshape(1).astype(jnp.float32))

    out = out[:, :N].reshape(C, B, H, W)
    return jnp.transpose(out, (1, 0, 2, 3))


def sitm_forward(x_nchw, pre_state_nchw, params, *, tile_lanes=1024):
    """Pallas implementation of SITM.forward(input, pre_state) (NCHW in/out)."""
    C = params["reset_w"].shape[0]
    B, Cin, H, W = x_nchw.shape
    assert Cin == C

    if pre_state_nchw is None:
        # pre_state == 0: reset * pre == 0 regardless of the reset conv, so the
        # whole gate path is dead -> specialized elementwise kernel.
        return _sitm_none(x_nchw, params["delta"], tile_lanes)

    # Stride-2 3x3 conv as a single XLA pass (avoids the 9x im2col HBM blow-up).
    pre = jax.lax.conv_general_dilated(
        pre_state_nchw, params["conv_w"], window_strides=(2, 2),
        padding=((1, 1), (1, 1)),
        dimension_numbers=("NCHW", "OIHW", "NCHW"))
    pre = pre + params["conv_b"].reshape(1, C, 1, 1)
    Hp, Wp = pre.shape[2], pre.shape[3]

    # PyTorch: pad input if its spatial size differs from conv(pre_state)
    if (Hp, Wp) != (H, W):
        dY, dX = Hp - H, Wp - W
        x_nchw = jnp.pad(
            x_nchw,
            ((0, 0), (0, 0),
             (dY // 2, dY - dY // 2), (dX // 2, dX - dX // 2)))

    N = B * Hp * Wp
    # Pre-stack (x || pre) channel-major and lane-dense: [2C, N], bf16 stream.
    stacked = jnp.concatenate(
        [x_nchw.astype(jnp.bfloat16), pre.astype(jnp.bfloat16)], axis=1)
    xp_cm = jnp.transpose(stacked, (1, 0, 2, 3)).reshape(2 * C, N)

    tn, n_pad = _pick_tile(N, tile_lanes)
    if n_pad != N:
        xp_cm = jnp.pad(xp_cm, ((0, 0), (0, n_pad - N)))

    w_cat = params["reset_w"][:, :, 0, 0].astype(jnp.bfloat16)       # [C, 2C]
    br = params["reset_b"].reshape(C, 1).astype(jnp.float32)         # [C, 1]
    delta = params["delta"].reshape(1).astype(jnp.float32)           # [1] (SMEM)

    out = pl.pallas_call(
        _sitm_gate_kernel,
        out_shape=jax.ShapeDtypeStruct((C, n_pad), jnp.float32),
        grid_spec=pltpu.PrefetchScalarGridSpec(
            num_scalar_prefetch=0,
            grid=(n_pad // tn,),
            in_specs=[
                pl.BlockSpec((2 * C, tn), lambda i: (0, i)),        # x||pre slab
                pl.BlockSpec((C, 2 * C), lambda i: (0, 0)),         # reset weight
                pl.BlockSpec((C, 1), lambda i: (0, 0)),             # reset bias
                pl.BlockSpec(memory_space=pltpu.MemorySpace.SMEM),  # delta
            ],
            out_specs=pl.BlockSpec((C, tn), lambda i: (0, i)),
        ),
        compiler_params=pltpu.CompilerParams(dimension_semantics=("parallel",)),
    )(xp_cm, w_cat, br, delta)

    out = out[:, :N].reshape(C, B, Hp, Wp)
    return jnp.transpose(out, (1, 0, 2, 3))


# ----------------------------------------------------------------------------
# Pure-JAX reference (mirrors the PyTorch forward) for verification
# ----------------------------------------------------------------------------
def sitm_reference(x_nchw, pre_state_nchw, params):
    if pre_state_nchw is None:
        B, C, H, W = x_nchw.shape
        pre = jnp.zeros((B, C, H, W), jnp.float32)
    else:
        pre = jax.lax.conv_general_dilated(
            pre_state_nchw, params["conv_w"], window_strides=(2, 2),
            padding=((1, 1), (1, 1)),
            dimension_numbers=("NCHW", "OIHW", "NCHW"))
        pre = pre + params["conv_b"].reshape(1, -1, 1, 1)
    x = x_nchw
    if pre.shape[2] != x.shape[2] or pre.shape[3] != x.shape[3]:
        dY, dX = pre.shape[2] - x.shape[2], pre.shape[3] - x.shape[3]
        x = jnp.pad(x, ((0, 0), (0, 0),
                        (dY // 2, dY - dY // 2), (dX // 2, dX - dX // 2)))
    stacked = jnp.concatenate([x, pre], axis=1)
    out = jax.lax.conv_general_dilated(
        stacked, params["reset_w"], (1, 1), "VALID",
        dimension_numbers=("NCHW", "OIHW", "NCHW"))
    out = out + params["reset_b"].reshape(1, -1, 1, 1)
    reset = jax.nn.sigmoid(out)
    update = jax.nn.sigmoid(x + reset * pre)
    return x + params["delta"].reshape(1, 1, 1, 1) * (update * x)


if __name__ == "__main__":
    key = jax.random.PRNGKey(0)
    k1, k2, k3, k4, k5, k6, k7 = jax.random.split(key, 7)

    B, C, hid = 2, 4, 8
    x = jax.random.normal(k1, (B, C, 16, 16), jnp.float32)
    pre_state = jax.random.normal(k2, (B, hid, 32, 32), jnp.float32)

    params = {
        "conv_w": 0.1 * jax.random.normal(k3, (C, hid, 3, 3), jnp.float32),
        "conv_b": 0.1 * jax.random.normal(k4, (C,), jnp.float32),
        "reset_w": 0.1 * jax.random.normal(k5, (C, 2 * C, 1, 1), jnp.float32),
        "reset_b": 0.1 * jax.random.normal(k6, (C,), jnp.float32),
        "delta": jnp.array([0.1], jnp.float32),
    }

    def check(out, ref, name):
        assert out.shape == ref.shape, (name, out.shape, ref.shape)
        err = float(jnp.max(jnp.abs(out - ref)))
        assert jnp.allclose(out, ref, atol=2e-2, rtol=2e-2), (name, err)

    # Main path: conv(pre_state) matches input spatial size (32 -> 16).
    out = jax.block_until_ready(sitm_forward(x, pre_state, params))
    ref = sitm_reference(x, pre_state, params)
    check(out, ref, "main")

    # Spatial-mismatch path: conv(pre_state) is 17x17 -> input gets padded.
    pre_state2 = jax.random.normal(k7, (B, hid, 34, 34), jnp.float32)
    out2 = jax.block_until_ready(sitm_forward(x, pre_state2, params))
    ref2 = sitm_reference(x, pre_state2, params)
    check(out2, ref2, "pad")

    # pre_state = None path (specialized elementwise kernel).
    out3 = jax.block_until_ready(sitm_forward(x, None, params))
    ref3 = sitm_reference(x, None, params)
    check(out3, ref3, "none")

    print("KERNEL_OK")
</pallas_src>

<mosaic_0001>
module attributes {stable_mosaic.version = 11 : i64} {
  func.func @_sitm_gate_kernel(%arg0: i32, %arg1: memref<8x256xbf16, #tpu.memory_space<vmem>>, %arg2: memref<4x8xbf16, #tpu.memory_space<vmem>>, %arg3: memref<4x1xf32, #tpu.memory_space<vmem>>, %arg4: memref<1xf32, #tpu.memory_space<smem>>, %arg5: memref<4x256xf32, #tpu.memory_space<vmem>>) attributes {dimension_semantics = [#tpu.dimension_semantics<parallel>], iteration_bounds = array<i64: 2>, scalar_prefetch = 0 : i64, scratch_operands = 0 : i64, tpu.core_type = #tpu.core_type<tc>, window_params = [{transform_indices = @transform_0, window_bounds = array<i64: 8, 256>}, {pipeline_mode = #tpu.pipeline_mode<synchronous>, transform_indices = @transform_1, window_bounds = array<i64: 4, 8>}, {pipeline_mode = #tpu.pipeline_mode<synchronous>, transform_indices = @transform_2, window_bounds = array<i64: 4, 1>}, {transform_indices = @transform_3, window_bounds = array<i64: 1>}, {transform_indices = @transform_4, window_bounds = array<i64: 4, 256>}]} {
    %c0 = arith.constant 0 : index
    %c0_0 = arith.constant 0 : index
    %0 = vector.load %arg1[%c0, %c0_0] : memref<8x256xbf16, #tpu.memory_space<vmem>>, vector<8x256xbf16>
    %c0_1 = arith.constant 0 : index
    %c0_2 = arith.constant 0 : index
    %1 = vector.load %arg2[%c0_1, %c0_2] : memref<4x8xbf16, #tpu.memory_space<vmem>>, vector<4x8xbf16>
    %cst = arith.constant dense<0.000000e+00> : vector<4x256xf32>
    %2 = tpu.matmul %1, %0, %cst {dimension_numbers = #tpu.dot_dimension_numbers<[1], [0], [0], [1], [0, 0, 1, 1], [], []>} : vector<4x8xbf16>, vector<8x256xbf16>, vector<4x256xf32> -> vector<4x256xf32>
    %c0_3 = arith.constant 0 : index
    %c0_4 = arith.constant 0 : index
    %3 = vector.load %arg3[%c0_3, %c0_4] : memref<4x1xf32, #tpu.memory_space<vmem>>, vector<4x1xf32>
    %4 = vector.broadcast %3 : vector<4x1xf32> to vector<4x256xf32>
    %5 = arith.addf %2, %4 : vector<4x256xf32>
    %6 = arith.negf %5 : vector<4x256xf32>
    %7 = math.exp %6 : vector<4x256xf32>
    %cst_5 = arith.constant 1.000000e+00 : f32
    %8 = vector.broadcast %cst_5 : f32 to vector<4x256xf32>
    %9 = arith.addf %8, %7 : vector<4x256xf32>
    %10 = arith.divf %8, %9 : vector<4x256xf32>
    %11 = arith.extf %0 : vector<8x256xbf16> to vector<8x256xf32>
    %12 = vector.extract_strided_slice %11 {offsets = [0, 0], sizes = [4, 256], strides = [1, 1]} : vector<8x256xf32> to vector<4x256xf32>
    %13 = vector.extract_strided_slice %11 {offsets = [4, 0], sizes = [4, 256], strides = [1, 1]} : vector<8x256xf32> to vector<4x256xf32>
    %14 = arith.mulf %10, %13 : vector<4x256xf32>
    %15 = arith.addf %12, %14 : vector<4x256xf32>
    %16 = arith.negf %15 : vector<4x256xf32>
    %17 = math.exp %16 : vector<4x256xf32>
    %cst_6 = arith.constant 1.000000e+00 : f32
    %18 = vector.broadcast %cst_6 : f32 to vector<4x256xf32>
    %19 = arith.addf %18, %17 : vector<4x256xf32>
    %20 = arith.divf %18, %19 : vector<4x256xf32>
    %c0_7 = arith.constant 0 : index
    %21 = memref.load %arg4[%c0_7] : memref<1xf32, #tpu.memory_space<smem>>
    %22 = arith.mulf %20, %12 : vector<4x256xf32>
    %23 = vector.broadcast %21 : f32 to vector<4x256xf32>
    %24 = arith.mulf %23, %22 : vector<4x256xf32>
    %25 = arith.addf %12, %24 : vector<4x256xf32>
    %c0_8 = arith.constant 0 : index
    %c0_9 = arith.constant 0 : index
    %26 = vector.load %arg5[%c0_8, %c0_9] : memref<4x256xf32, #tpu.memory_space<vmem>>, vector<4x256xf32>
    tpu.vector_store %arg5[%c0_8, %c0_9], %25 {strides = array<i32>} : memref<4x256xf32, #tpu.memory_space<vmem>>, vector<4x256xf32>,
    return
  }
  func.func @transform_0(%arg0: i32) -> (i32, i32) {
    %c0_i32 = arith.constant 0 : i32
    %c0_i32_0 = arith.constant 0 : i32
    return %c0_i32, %arg0 : i32, i32
  }
  func.func @transform_1(%arg0: i32) -> (i32, i32) {
    %c0_i32 = arith.constant 0 : i32
    %c0_i32_0 = arith.constant 0 : i32
    %c0_i32_1 = arith.constant 0 : i32
    return %c0_i32, %c0_i32_0 : i32, i32
  }
  func.func @transform_2(%arg0: i32) -> (i32, i32) {
    %c0_i32 = arith.constant 0 : i32
    %c0_i32_0 = arith.constant 0 : i32
    %c0_i32_1 = arith.constant 0 : i32
    return %c0_i32, %c0_i32_0 : i32, i32
  }
  func.func @transform_3(%arg0: i32) -> i32 {
    %c0_i32 = arith.constant 0 : i32
    %c0_i32_0 = arith.constant 0 : i32
    return %c0_i32 : i32
  }
  func.func @transform_4(%arg0: i32) -> (i32, i32) {
    %c0_i32 = arith.constant 0 : i32
    %c0_i32_0 = arith.constant 0 : i32
    return %c0_i32, %arg0 : i32, i32
  }
}

</mosaic_0001>

<bundles_post_ra>
// kernel: tpu_custom_call.1
= control target key start
LH: loop header
LB: loop body
LE: loop exit
PB: predicated region body
PF: predicated region fallthrough
CT: control target
= control target key end

     0   :  { %s807_s0 = inlined_call_operand.hbm [shape: bf16[8,512], index: 0, kind: input, shape index: {}]   ;;  %s808_s1 = inlined_call_operand.vmem [shape: bf16[4,8], index: 1, kind: input, shape index: {}]   ;;  %s809_s2 = inlined_call_operand.vmem [shape: f32[4,1], index: 2, kind: input, shape index: {}]   ;;  %s810_s3 = inlined_call_operand.<no memory space> [shape: f32[1], index: 3, kind: input, shape index: {}]   ;;  %s811_s4 = inlined_call_operand.hbm [shape: f32[4,512], index: 4, kind: output, shape index: {}]  }
   0x1   :  { %9 = sst [smem:[#allocation2]] %s810_s3 }
   0x2   :  { %10 = vsyncpa [#allocation4], 0 }
   0x3   :  { %12 = vsyncpa [#allocation4 + $0x1], 0 }
   0x4   :  { %13 = vsyncpa [#allocation5], 0 }
   0x5   :  { %15 = vsyncpa [#allocation5 + $0x1], 0  ;;  %s636_s17 = smov 0   ;;  %s638_s18 = smov 0  }
   0x6   :  { %s640_s19 = smov 0   ;;  %s642_s20 = smov 0  }
   0x7 LB: > { %s657_s3 = sadd.s32 4294967295, %s603_s20   ;;  %s417_s21 = sadd.s32 4294967294, %s603_s20   ;;  %s603_s20 = sphi %s642_s20, %s826_s20   ;;  %s599_s19 = sphi %s640_s19, %s825_s19   ;;  %s595_s18 = sphi %s638_s18, %s824_s18   ;;  %s591_s17 = sphi %s636_s17, %s823_s17  }
   0x8   : > { %s661_s22 = sadd.s32 1, %s603_s20   ;;  %s28_s23 = sadd.s32 1, %s599_s19 }
   0x9   : > { %s25_s24 = ssub.s32 %s603_s20, %s661_s22  ;;  %p35_p0 = scmp.ne.s32.totalorder %s599_s19, %s595_s18 }
   0xa   : > { %p26_p1 = scmp.eq.s32.totalorder %s25_s24, 0  ;;  %p36_p2 = scmp.eq.s32.totalorder %s603_s20, 0 }
   0xb   : > { %p41_p3 = scmp.ne.s32.totalorder %s595_s18, %s591_s17  ;;  %p42_p4 = scmp.eq.s32.totalorder %s657_s3, 0 }
   0xc   : > { %s673_s25 = scalar_select %p26_p1, %s599_s19, %s28_s23  }
   0xd   : > { %p675_p5 = por %p36_p2, %p35_p0  ;;  %p679_p6 = por %p42_p4, %p41_p3 }
   0xe   : > { %p128_p7 = scmp.eq.s32.totalorder %s657_s3, 1  ;;  %p134_p8 = scmp.eq.s32.totalorder %s417_s21, 1 }
   0xf   : > { %p453_p10 = scmp.lt.s32.totalorder %s603_s20, 2  ;;  %s163_s30 = sand.u32 1, %s599_s19  }
  0x10   : > { %p686_p11 = por %p128_p7, %p35_p0  ;;  %p690_p12 = por %p134_p8, %p41_p3 }
  0x11   : > { %s439_s5 = sshll.u32 %s603_s20, 7  ;;  %s420_s6 = sshll.u32 %s163_s30, 3 }
  0x12   : > { %s815_s28 = scalar_select %p686_p11, 1, 0 }
  0x13   : > { %s816_s29 = scalar_select %p690_p12, 1, 0 }
  0x14   : > { %s699_s9 = scalar_lea.hbm %s807_s0, %s439_s5  ;;  %s167_s10 = scalar_lea.vmem [#allocation3], %s420_s6 }
  0x15   : > { %s175_s11 = sshll.u32 %s167_s10, 4  ;;  %p703_p13 = pnand %p453_p10, %p675_p5  ;;  %s707_s11 = int_to_ptr.vmem [resolvable:$true] %s175_s11 }
  0x16   : > { %s164_s13 = scalar_lea.sflag [#allocation4], %s163_s30  ;;  %s507_s14 = scalar_lea.hbm %s699_s9, 128 }
  0x17   : > { %p508_p2 = scmp.ne.s32.totalorder %s699_s9, %s507_s14  ;;  %p509_p3 = pneg %p703_p13 }
  0x18   : > { %s512_s21 = scalar_lea.hbm %s807_s0, 256  ;;  %p513_p5 = scmp.lt.u32.totalorder %s699_s9, %s807_s0 }
  0x19   : > { %p510_p4 = pnand %p509_p3, %p508_p2  ;;  %p514_p8 = scmp.lt.u32.totalorder %s512_s21, %s507_s14 }
  0x1a   : > { %p516_p9 = scmp.lt.u32.totalorder %s507_s14, %s699_s9 }
  0x1b   : > { %p511_p7 = pneg %p510_p4  ;;  %p515_p10 = por %p514_p8, %p513_p5 }
  0x1d   : > { %p517_p0 = por %p516_p9, %p515_p10 }
  0x1f   : > { %p518_p1 = pnand %p517_p0, %p511_p7 }
  0x21   : > { %521 = shalt.err (!%p518_p1)
}
  0x22   : > { %s522_s26 = scalar_lea.vmem %s707_s11, 128  ;;  %s605_s30 = smov [#allocation3]  }
  0x23   : > { %p523_p2 = scmp.ne.s32.totalorder %s707_s11, %s522_s26  ;;  %s527_s5 = sshll.u32 %s605_s30, 4  ;;  %s528_s5 = int_to_ptr.vmem [resolvable:$false] %s527_s5 }
  0x24   : > { %s529_s6 = scalar_lea.vmem %s528_s5, 256  ;;  %p530_p11 = scmp.lt.s32.totalorder %s707_s11, %s528_s5 }
  0x25   : > { %p525_p4 = pnand %p523_p2, %p509_p3  ;;  %p531_p5 = scmp.lt.s32.totalorder %s529_s6, %s522_s26 }
  0x27   : > { %p526_p12 = pneg %p525_p4  ;;  %p532_p8 = por %p531_p5, %p530_p11 }
  0x29   : > { %p533_p9 = pnand %p532_p8, %p526_p12 }
  0x2b   : > { %536 = shalt.err (!%p533_p9)
}
  0x2c   : > { %448 = dma.hbm_to_vmem [thread:$0]  (!%p703_p13), %s699_s9, 128, %s707_s11, %s164_s13  }
  0x2d   : > { %p818_p0 = scmp.lt.s32.totalorder %s603_s20, 3  ;;  %p819_p1 = scmp.ge.s32.totalorder %s603_s20, 1 }
  0x2f   : > { %p181_p3 = pnand %p819_p1, %p818_p0 }
  0x30   : > { %s741_s7 = sand.u32 (!%p181_p3), 1, %s595_s18  }
  0x31   : > { %184 = sbr.rel (%p181_p3) target bundleno = 357 (0x165), region = 36  ;;  %s424_s8 = sshll.u32 (!%p181_p3), %s741_s7, 3 }
  0x32   : > { %s187_s10 = scalar_lea.sflag (!%p181_p3), [#allocation4], %s741_s7  ;;  %s190_s12 = scalar_lea.vmem (!%p181_p3), [#allocation3], %s424_s8 }
  0x38   : > { %582 = dma.done.wait (%p679_p6), %s187_s10, 128  }
  0x39   : > { %584 = vsyncadd (%p679_p6), %s187_s10, 4294967168  ;;  %v606_v0 = vmov 0   ;;  %v218_v1 = vld [vmem:[%s190_s12] sm:$0xff]  ;;  %vm235_vm0 = vcmask 1043456   ;;  %vm231_vm1 = vcmask 64512   ;;  %s319_s27 = sld [smem:[#allocation2]] }
  0x3a   : > { %274 = vmatprep.mubr.bf16.mxu0 %v606_v0  ;;  %488 = vset.pattern.permute.xlu0 %v606_v0  ;;  %v220_v2 = vld [vmem:[%s809_s2] sm:$0xf]  ;;  %v427_v3 = vcombine.high %v218_v1, %v218_v1  ;;  %v426_v4 = vcombine.low %v218_v1, %v218_v1  ;;  %v295_v20 = vunpack.c.l.bf16 %v218_v1  ;;  %v296_v21 = vunpack.c.h.bf16 %v218_v1  ;;  %s440_s15 = sshll.u32 %s657_s3, 7  ;;  %s214_s16 = scalar_lea.vmem [#allocation6], %s424_s8 }
  0x3b   : > { %223 = vperm.xlu0 %488, %v220_v2   ;;  %v219_v6 = vld [vmem:[%s808_s1] sm:$0x3]  ;;  %s347_s21 = sshll.u32 %s214_s16, 4  ;;  %s763_s26 = scalar_lea.hbm %s811_s4, %s440_s15  ;;  %s765_s21 = int_to_ptr.vmem [resolvable:$true] %s347_s21 }
  0x3c   : > { %428 = vmatprep.subr.msk.bf16.mxu0 %vm235_vm0, %v427_v3  ;;  %v237_v5 = vsel %vm235_vm0, %v426_v4, 0  ;;  %v299_v22 = vrot.slane %v295_v20, 4  ;;  %v300_v23 = vrot.slane %v296_v21, 4  ;;  %s333_s30 = scalar_lea.sflag [#allocation5], %s741_s7  ;;  %s537_s5 = scalar_lea.vmem %s765_s21, 128 }
  0x3d   : > { %243 = vmatpush1.bf16.msra.mxu0 %v237_v5  ;;  %p538_p6 = scmp.ne.s32.totalorder %s765_s21, %s537_s5  ;;  %p820_p11 = scmp.ne.s32.totalorder %s815_s28, 0 }
  0x3e   : > { %s607_s3 = smov [#allocation6]  }
  0x3f   : > { %v322_v37 = vstv %s319_s27  ;;  %p539_p12 = pnand %p538_p6, %p820_p11  ;;  %s541_s6 = sshll.u32 %s607_s3, 4  ;;  %s542_s6 = int_to_ptr.vmem [resolvable:$false] %s541_s6 }
  0x40   : > { %429 = vmatmul.mubr.msk.bf16.vlgmr.msra.gmra.mrb[0].mxu0 %vm231_vm1, %v219_v6  ;;  %s543_s8 = scalar_lea.vmem %s542_s6, 256  ;;  %p544_p7 = scmp.lt.s32.totalorder %s765_s21, %s542_s6 }
  0x41   : > { %p540_p13 = pneg %p539_p12  ;;  %p545_p10 = scmp.lt.s32.totalorder %s543_s8, %s537_s5 }
  0x43   : > { %p546_p2 = por %p545_p10, %p544_p7 }
  0x45   : > { %p547_p4 = pnand %p546_p2, %p540_p13 }
  0xba   : > { %v224_v7 = vpop.permute.xlu0 %223 }
 0x113   : > { %v276_v8 = vpop.f32.mrb[0].mxu0 }
 0x114   : > { %v277_v9 = vadd.f32 %v276_v8, %v224_v7  ;;  %v278_v10 = vpop.f32.mrb[1].mxu0 }
 0x115   : > { %v279_v11 = vadd.f32 %v278_v10, %v224_v7  ;;  %v280_v12 = vpop.f32.mrb[2].mxu0 }
 0x116   : > { %v430_v13 = vmul.f32 -1.442695, %v277_v9  ;;  %v281_v14 = vpop.f32.mrb[3].mxu0 }
 0x117   : > { %v431_v15 = vmul.f32 -1.442695, %v279_v11 }
 0x118   : > { %491 = vpow2.f32 %v430_v13 }
 0x119   : > { %493 = vpow2.f32 %v431_v15 }
 0x122   : > { %v492_v16 = vpop.eup %491 }
 0x123   : > { %v494_v17 = vpop.eup %493  ;;  %v289_v18 = vadd.f32 1.0, %v492_v16 }
 0x124   : > { %v290_v19 = vadd.f32 1.0, %v494_v17 }
 0x125   : > { %495 = vrcp.f32 %v289_v18 }
 0x126   : > { %497 = vrcp.f32 %v290_v19 }
 0x12f   : > { %v496_v24 = vpop.eup %495 }
 0x130   : > { %v498_v25 = vpop.eup %497  ;;  %v303_v26 = vmul.f32 %v496_v24, %v299_v22 }
 0x131   : > { %v304_v27 = vmul.f32 %v498_v25, %v300_v23 }
 0x132   : > { %v305_v28 = vadd.f32 %v303_v26, %v295_v20 }
 0x133   : > { %v306_v29 = vadd.f32 %v304_v27, %v296_v21 }
 0x134   : > { %v432_v30 = vmul.f32 -1.442695, %v305_v28 }
 0x135   : > { %v433_v31 = vmul.f32 -1.442695, %v306_v29 }
 0x136   : > { %499 = vpow2.f32 %v432_v30 }
 0x137   : > { %501 = vpow2.f32 %v433_v31 }
 0x140   : > { %v500_v32 = vpop.eup %499 }
 0x141   : > { %v502_v33 = vpop.eup %501  ;;  %v313_v34 = vadd.f32 1.0, %v500_v32 }
 0x142   : > { %v314_v35 = vadd.f32 1.0, %v502_v33 }
 0x143   : > { %503 = vrcp.f32 %v313_v34 }
 0x144   : > { %505 = vrcp.f32 %v314_v35 }
 0x14d   : > { %v504_v36 = vpop.eup %503 }
 0x14e   : > { %v506_v38 = vpop.eup %505  ;;  %v320_v39 = vmul.f32 %v504_v36, %v295_v20 }
 0x14f   : > { %v321_v40 = vmul.f32 %v506_v38, %v296_v21 }
 0x150   : > { %v323_v41 = vmul.f32 %v322_v37, %v320_v39 }
 0x151   : > { %v324_v42 = vmul.f32 %v322_v37, %v321_v40 }
 0x152   : > { %v325_v43 = vadd.f32 %v323_v41, %v295_v20 }
 0x153   : > { %v326_v44 = vadd.f32 %v324_v42, %v296_v21 }
 0x155   : > { %v329_v45 = vcombine.low %v325_v43, %v326_v44 }
 0x157   : > { %331 = vst [vmem:[%s214_s16] sm:$0xff] %v329_v45 }
 0x158   : > { %550 = shalt.err (!%p547_p4)
}
 0x159   : > { %s551_s7 = scalar_lea.hbm %s763_s26, 128  ;;  %s555_s9 = scalar_lea.hbm %s811_s4, 256 }
 0x15a   : > { %p552_p5 = scmp.ne.s32.totalorder %s763_s26, %s551_s7  ;;  %p556_p0 = scmp.lt.u32.totalorder %s763_s26, %s811_s4 }
 0x15b   : > { %p557_p1 = scmp.lt.u32.totalorder %s555_s9, %s551_s7  ;;  %p559_p6 = scmp.lt.u32.totalorder %s551_s7, %s763_s26 }
 0x15c   : > { %p553_p8 = pnand %p552_p5, %p820_p11 }
 0x15d   : > { %p558_p3 = por %p557_p1, %p556_p0 }
 0x15e   : > { %p554_p9 = pneg %p553_p8 }
 0x15f   : > { %p560_p12 = por %p559_p6, %p558_p3 }
 0x161   : > { %p561_p13 = pnand %p560_p12, %p554_p9 }
 0x163   : > { %564 = shalt.err (!%p561_p13)
}
 0x164   : > { %443 = dma.vmem_to_hbm [thread:$0]  (%p820_p11), %s765_s21, 128, %s763_s26, %s333_s30  }
 0x165 PF: > { %s359_s14 = sand.u32 1, %s591_s17   ;;  %p821_p7 = scmp.ne.s32.totalorder %s816_s29, 0 }
 0x166   : > { %p822_p10 = scmp.ge.s32.totalorder %s603_s20, 2  ;;  %s360_s27 = scalar_lea.sflag [#allocation5], %s359_s14 }
 0x168   : > { %p450_p2 = pnand %p822_p10, %p821_p7 }
 0x16a   : > { %586 = dma.done.wait (!%p450_p2), %s360_s27, 128  }
 0x16b   : > { %588 = vsyncadd (!%p450_p2), %s360_s27, 4294967168  ;;  %p18_p4 = scmp.ge.s32.totalorder %s661_s22, 4   ;;  %s823_s17 = smov %s595_s18 }
 0x16c   : > { %s824_s18 = smov %s599_s19  ;;  %s825_s19 = smov %s673_s25 }
 0x16d   : > { %s826_s20 = smov %s661_s22  ;;  %20 = sbr.rel (!%p18_p4) target bundleno = 7 (0x7), region = 81 }
 0x174   :  { %365 = vsyncpa [#allocation4], 1 }
 0x175   :  { %367 = vsyncpa [#allocation4 + $0x1], 1 }
 0x176   :  { %368 = vsyncpa [#allocation5], 1 }
 0x177   :  { %370 = vsyncpa [#allocation5 + $0x1], 1 }

</bundles_post_ra>
